<compile_context>
chip_gen: v6e
topology: v6e:2x2x1
jax: 0.10.0
libtpu: 0.0.40
codegen_flags: <defaults>
</compile_context>

<pallas_src>
import jax
import jax.numpy as jnp
from jax.experimental import pallas as pl
from jax.experimental.pallas import tpu as pltpu  # noqa: F401  (uniform projector-kernel API)


def identity_map(x: jax.Array, *args, **kwargs) -> jax.Array:
    """IdentityMap.forward: out = x. The fastest kernel is no kernel."""
    return x


def _identity_alias_kernel(x_ref, o_ref):
    # The output buffer is aliased to the input buffer (input_output_aliases),
    # so it already holds the input values. Nothing to compute or move, and no
    # ordering pin is needed: the alias itself defines the output.
    del x_ref, o_ref


def identity_map_pallas(x: jax.Array) -> jax.Array:
    """IdentityMap.forward behind a pallas_call (uniform projector API).

    Zero data movement when the alias binds: input aliased to output, both
    refs left in HBM (pl.ANY), no grid, no VMEM staging, empty kernel body.

    Donation semantics: for the alias to bind with no copy, wrap the call in
    jax.jit(..., donate_argnums=0) and do not use `x` afterwards. Without
    donation, XLA inserts a defensive HBM copy of x (correct; x stays valid)
    — which is exactly the traffic a plain `return x` avoids entirely.
    """
    return pl.pallas_call(
        _identity_alias_kernel,
        out_shape=jax.ShapeDtypeStruct(x.shape, x.dtype),
        in_specs=[pl.BlockSpec(memory_space=pl.ANY)],
        out_specs=pl.BlockSpec(memory_space=pl.ANY),
        input_output_aliases={0: 0},
    )(x)


def identity_map_config():
    # Mirrors the PyTorch `config` property (pure metadata, no compute).
    return {"mm_projector_type": "identity"}


if __name__ == "__main__":
    key = jax.random.PRNGKey(0)
    # Shapes consistent with an mm_projector input: batch=2, seq=8, hidden=32.
    x = jax.random.normal(key, (2, 8, 32), dtype=jnp.float32)
    expected = jnp.copy(x)  # independent buffer, safe to compare against

    # 1) Primary path: pure pass-through (zero-cost identity).
    y_fast = identity_map(x)
    assert y_fast.shape == expected.shape and y_fast.dtype == expected.dtype
    assert jnp.array_equal(y_fast, expected)

    # 2) Pallas path, eager: x is not donated here, so XLA may insert a
    #    defensive copy — correct either way, and x remains usable.
    y_kernel = identity_map_pallas(x)
    jax.block_until_ready(y_kernel)
    assert y_kernel.shape == expected.shape and y_kernel.dtype == expected.dtype
    assert jnp.array_equal(y_kernel, expected)

    # 3) Pallas path under jit (the intended deployment wrapper). Donation is
    #    left to the caller; see identity_map_pallas docstring.
    y_jit = jax.jit(identity_map_pallas)(x)
    jax.block_until_ready(y_jit)
    assert jnp.array_equal(y_jit, expected)

    assert identity_map_config() == {"mm_projector_type": "identity"}
    print("KERNEL_OK")
</pallas_src>

<mosaic_0001>
module attributes {stable_mosaic.version = 11 : i64} {
  func.func @_identity_alias_kernel(%arg0: memref<2x8x32xf32, #tpu.memory_space<any>>, %arg1: memref<2x8x32xf32, #tpu.memory_space<any>>) attributes {dimension_semantics = [], scalar_prefetch = 0 : i64, scratch_operands = 0 : i64, tpu.core_type = #tpu.core_type<tc>} {
    return
  }
}

</mosaic_0001>

<bundles_post_ra>
// kernel: tpu_custom_call.1
= control target key start
LH: loop header
LB: loop body
LE: loop exit
PB: predicated region body
PF: predicated region fallthrough
CT: control target
= control target key end

     0   :  { %s16_s0 = inlined_call_operand.hbm [shape: f32[2,8,32], index: 0, kind: input, shape index: {}, may-alias: {0,1}]   ;;  %s17_s1 = inlined_call_operand.hbm [shape: f32[2,8,32], index: 1, kind: output, shape index: {}, may-alias: {0,1}]  }

</bundles_post_ra>
